<compile_context>
chip_gen: v7x
topology: tpu7x:2x2x1
jax: 0.10.0
libtpu: 0.0.40
codegen_flags: <defaults>
</compile_context>

<pallas_src>
import jax
import jax.numpy as jnp
from jax.experimental import pallas as pl
from jax.experimental.pallas import tpu as pltpu


def _scale_kernel(scale_ref, x_ref, o_ref):
    # scale lives in SMEM as f32; cast to x.dtype so low-precision inputs match
    # PyTorch's gamma-stored-in-x.dtype semantics (e.g. bf16 rounding of 1e-5).
    s = scale_ref[0, 0].astype(x_ref.dtype)
    o_ref[...] = x_ref[...] * s


def _chip_tuning():
    """Return (target tile bytes, scoped-VMEM limit bytes) per TPU generation."""
    tile = 2 * 1024 * 1024  # v5e/v6e: mem-bound plateau already at ~1-4 MiB tiles
    try:
        info = pltpu.get_tpu_info()
        # v7x-class: 64 MiB VMEM/TC but ~3.2 TB/s HBM -> larger tiles to
        # amortize the ~0.35 us fixed per-grid-step overhead.
        if info.vmem_capacity_bytes <= 80 * 1024 * 1024:
            tile = 8 * 1024 * 1024
    except Exception:
        pass  # non-TPU / older API: keep the conservative default
    # in + out, double-buffered, plus slack (48 MiB on v7x, 24 MiB otherwise).
    limit = min(4 * tile + 16 * 1024 * 1024, 100 * 1024 * 1024)
    return tile, limit


def _pick_lane(n: int, sublane: int) -> int:
    """Lane width for a (rows, lane) flat view of an n-element tensor.

    Prefer the largest multiple of 128 that divides n (unmasked vst) while
    still leaving >= 2*sublane rows (so the row axis can split across two
    TensorCores on v7x).  If no multiple of 128 divides n, take the largest
    divisor <= 2048 (full-extent lane block; masked tail vreg per row but NO
    extra pad/slice HBM passes).
    """
    mult128 = [d for d in range(2048, 127, -128) if n % d == 0]
    for lane in mult128:
        if n // lane >= 2 * sublane:
            return lane
    if mult128:
        return mult128[0]  # tensor too small to split; take the widest lane
    d = min(2048, n)
    while d > 1 and n % d != 0:
        d -= 1
    return d


def _pick_row_tile(rows: int, sublane: int, max_rows: int) -> int:
    """Row-tile (multiple of sublane) targeting >= 2 tiles and an even count."""
    if rows <= sublane:
        return rows  # single full-extent block
    # Cap so that we get at least 2 tiles (both v7x TensorCores busy).
    half = ((rows + 1) // 2 + sublane - 1) // sublane * sublane
    cap = max(sublane, min(max_rows, half))
    t = cap
    while t >= sublane:
        if (-(-rows // t)) % 2 == 0:  # even tile count -> balanced megacore split
            return t
        t -= sublane
    return cap


def mnv4_layer_scale(x: jax.Array, init_value, *, in_place: bool = False) -> jax.Array:
    """LayerScale: x * (init_value * ones(x.shape[-1])) == x * init_value."""
    orig_shape = x.shape
    dtype = x.dtype
    n = x.size
    itemsize = jnp.dtype(dtype).itemsize

    # Sublane granularity: 8 for 32-bit, 16 for bf16, 32 for 8-bit dtypes.
    sublane = max(8, 8 * (4 // itemsize))

    # ---- lane-dense 2-D view of the flat tensor (free bitcast, never padded) --
    lane = _pick_lane(n, sublane)
    rows = n // lane
    x2d = x.reshape(rows, lane)

    # ---- per-generation row tiling -------------------------------------------
    tile_bytes, vmem_limit = _chip_tuning()
    max_rows = max(sublane, (tile_bytes // (lane * itemsize)) // sublane * sublane)
    row_tile = _pick_row_tile(rows, sublane, max_rows)
    grid = (pl.cdiv(rows, row_tile),)

    # Runtime scalar scale (SMEM) -> one compile per shape, not per value.
    scale = jnp.asarray(init_value, dtype=jnp.float32).reshape(1, 1)

    out2d = pl.pallas_call(
        _scale_kernel,
        out_shape=jax.ShapeDtypeStruct((rows, lane), dtype),
        grid=grid,
        in_specs=[
            pl.BlockSpec(memory_space=pltpu.MemorySpace.SMEM),   # scale (1,1)
            pl.BlockSpec((row_tile, lane), lambda i: (i, 0)),    # x tile
        ],
        out_specs=pl.BlockSpec((row_tile, lane), lambda i: (i, 0)),
        input_output_aliases=({1: 0} if in_place else {}),
        compiler_params=pltpu.CompilerParams(
            dimension_semantics=("parallel",),
            vmem_limit_bytes=vmem_limit,
        ),
    )(scale, x2d)

    return out2d.reshape(orig_shape)


if __name__ == "__main__":
    key = jax.random.PRNGKey(0)
    init_value = 1e-5
    fn = jax.jit(mnv4_layer_scale)

    # Primary small NCHW input consistent with MobileNetV4-style usage.
    x = jax.random.normal(key, (2, 4, 16, 16), dtype=jnp.float32)
    out = jax.block_until_ready(fn(x, init_value))
    gamma_ref = init_value * jnp.ones((x.shape[-1],), dtype=x.dtype)
    expected = x * gamma_ref
    assert out.shape == x.shape
    assert jnp.allclose(out, expected, rtol=1e-6, atol=1e-9)

    # Non-128-divisible size MobileNetV4 actually produces (1x960x7x7):
    # exercises the pad-free divisor-lane path (lane=1960, ragged row tiles).
    x2 = jax.random.normal(jax.random.PRNGKey(0), (1, 960, 7, 7), dtype=jnp.float32)
    out2 = jax.block_until_ready(fn(x2, init_value))
    expected2 = x2 * (init_value * jnp.ones((x2.shape[-1],), dtype=x2.dtype))
    assert out2.shape == x2.shape
    assert jnp.allclose(out2, expected2, rtol=1e-6, atol=1e-9)

    print("KERNEL_OK")
</pallas_src>

<mosaic_0001>
module attributes {stable_mosaic.version = 11 : i64} {
  func.func @_scale_kernel(%arg0: i32, %arg1: memref<1x1xf32, #tpu.memory_space<smem>>, %arg2: memref<8x128xf32, #tpu.memory_space<vmem>>, %arg3: memref<8x128xf32, #tpu.memory_space<vmem>>) attributes {dimension_semantics = [#tpu.dimension_semantics<parallel>], iteration_bounds = array<i64: 2>, scalar_prefetch = 0 : i64, scratch_operands = 0 : i64, tpu.core_type = #tpu.core_type<tc>, window_params = [{transform_indices = @transform_0, window_bounds = array<i64: 1, 1>}, {transform_indices = @transform_1, window_bounds = array<i64: 8, 128>}, {transform_indices = @transform_2, window_bounds = array<i64: 8, 128>}]} {
    %c0 = arith.constant 0 : index
    %c0_0 = arith.constant 0 : index
    %0 = memref.load %arg1[%c0, %c0_0] : memref<1x1xf32, #tpu.memory_space<smem>>
    %c0_1 = arith.constant 0 : index
    %c0_2 = arith.constant 0 : index
    %1 = vector.load %arg2[%c0_1, %c0_2] : memref<8x128xf32, #tpu.memory_space<vmem>>, vector<8x128xf32>
    %2 = vector.broadcast %0 : f32 to vector<8x128xf32>
    %3 = arith.mulf %1, %2 : vector<8x128xf32>
    %c0_3 = arith.constant 0 : index
    %c0_4 = arith.constant 0 : index
    %4 = vector.load %arg3[%c0_3, %c0_4] : memref<8x128xf32, #tpu.memory_space<vmem>>, vector<8x128xf32>
    tpu.vector_store %arg3[%c0_3, %c0_4], %3 {strides = array<i32>} : memref<8x128xf32, #tpu.memory_space<vmem>>, vector<8x128xf32>,
    return
  }
  func.func @transform_0(%arg0: i32) -> (i32, i32) {
    %c0_i32 = arith.constant 0 : i32
    %c0_i32_0 = arith.constant 0 : i32
    %c0_i32_1 = arith.constant 0 : i32
    return %c0_i32, %c0_i32_0 : i32, i32
  }
  func.func @transform_1(%arg0: i32) -> (i32, i32) {
    %c0_i32 = arith.constant 0 : i32
    %c0_i32_0 = arith.constant 0 : i32
    return %arg0, %c0_i32 : i32, i32
  }
  func.func @transform_2(%arg0: i32) -> (i32, i32) {
    %c0_i32 = arith.constant 0 : i32
    %c0_i32_0 = arith.constant 0 : i32
    return %arg0, %c0_i32 : i32, i32
  }
}

</mosaic_0001>

<bundles_post_ra>
// kernel: mnv4_layer_scale.1
= control target key start
LH: loop header
LB: loop body
LE: loop exit
PB: predicated region body
PF: predicated region fallthrough
CT: control target
= control target key end

     0   :  { %s219_s11 = smov 0   ;;  %s247_s0 = inlined_call_operand.<no memory space> [shape: f32[1,1], index: 0, kind: input, shape index: {}]   ;;  %s248_s1 = inlined_call_operand.vmem [shape: f32[16,128], index: 1, kind: input, shape index: {}]   ;;  %s249_s2 = inlined_call_operand.vmem [shape: f32[16,128], index: 2, kind: output, shape index: {}]  }
   0x1   :  { %7 = sst [smem:[#allocation2]] %s247_s0 }
   0x2 LB: > { %s198_s12 = sadd.s32 4294967295, %s221_s11   ;;  %p202_p0 = scmp.ge.s32.totalorder %s221_s11, 1  ;;  %s221_s11 = sphi %s219_s11, %s13_s11  }
   0x3   : > { %p112_p1 = scmp.lt.s32.totalorder %s221_s11, 3 }
   0x5   : > { %p113_p2 = pnand %p202_p0, %p112_p1 }
   0x6   : > { %p132_p3 = scmp.lt.s32.totalorder (!%p113_p2), %s198_s12, 1  ;;  %s140_s13 = sld [smem:[#allocation2]] (!%p113_p2) }
   0x7   : > { %116 = sbr.rel (%p113_p2) target bundleno = 21 (0x15), region = 28 }
   0xc   : > { %v142_v1 = vstv (!%p113_p2), %s140_s13 }
   0xe   : > { %s251_s12 = smov (!%p132_p3, %s198_s12), 1 }
   0xf   : > { %s203_s14 = sshll.u32 %s251_s12, 3 }
  0x10   : > { %s135_s17 = scalar_lea.vmem %s248_s1, %s203_s14  ;;  %s139_s0 = scalar_lea.vmem %s249_s2, %s203_s14 }
  0x11   : > { %v141_v0 = vld [vmem:[%s135_s17] sm:$0xff] }
  0x12   : > { %v143_v2 = vmul.f32 %v142_v1, %v141_v0 }
  0x14   : > { %144 = vst [vmem:[%s139_s0] sm:$0xff] %v143_v2 }
  0x15 PF: > { %s13_s11 = sadd.s32 1, %s221_s11  }
  0x16   : > { %p10_p4 = scmp.ge.s32.totalorder %s13_s11, 4  }
  0x18   :  { %12 = sbr.rel (!%p10_p4) target bundleno = 2 (0x2), region = 58 }

</bundles_post_ra>
